<compile_context>
chip_gen: v6e
topology: v6e:2x2x1
jax: 0.10.0
libtpu: 0.0.40
codegen_flags: <defaults>
</compile_context>

<pallas_src>
import jax
import jax.numpy as jnp
import numpy as np
from jax import lax
from jax.experimental import pallas as pl
from jax.experimental.pallas import tpu as pltpu


# The 8 off-centre taps of the 3x3 kernel, in a fixed order shared by the
# kernel (roll shifts), the fused weight layout and the precomputed masks.
_TAPS = tuple((dy, dx) for dy in (-1, 0, 1) for dx in (-1, 0, 1)
              if (dy, dx) != (0, 0))


def make_fire_kernel(Csq_p, Nt, W):
    """Kernel for one lane tile of Nt = Bt*H*W lanes (whole images only)."""
    shifts = tuple((-(dy * W + dx)) % Nt for (dy, dx) in _TAPS)

    def kernel(x_ref, wsq_ref, bsq_ref, wall_ref, mask_ref, out_ref, stk_ref):
        # --- squeeze 1x1 conv + ReLU ---------------------------------------
        # Padded row `Csq` of bsq is 1.0 (and its weights are 0), so
        # sq[Csq, :] == 1.0 everywhere; the expand biases sit in column Csq of
        # the fused weight -> no broadcast-add in the kernel.
        sq = jnp.maximum(
            jnp.dot(wsq_ref[...], x_ref[...],
                    preferred_element_type=jnp.float32) + bsq_ref[...],
            0.0)                                                # (Csq_p, Nt)

        # --- stack [sq ; 8 rolled+masked windows] along sublanes ------------
        # Rolls are XLU lane rotations (free slot); masks are precomputed
        # 0/1 floats, so masking is a single VPU multiply per tap.
        stk_ref[0:Csq_p, :] = sq
        for t, sh in enumerate(shifts):
            win = pltpu.roll(sq, sh, axis=1)
            stk_ref[(t + 1) * Csq_p:(t + 2) * Csq_p, :] = (
                win * mask_ref[t:t + 1, :])

        # --- one deep-K MXU matmul = expand1x1 + full 3x3 conv + biases -----
        acc = jnp.dot(wall_ref[...], stk_ref[...],
                      preferred_element_type=jnp.float32)       # (Cout, Nt)

        # --- single ReLU, single lane-dense store ---------------------------
        out_ref[...] = jnp.maximum(acc, 0.0).astype(out_ref.dtype)

    return kernel


def fire_forward(x_nchw, params, lane_tiles=None):
    """Pallas Fire.forward for an NCHW float32 input.

    `params` uses torch Conv2d layouts:
      wsq (Csq, Cin, 1, 1), bsq (Csq,), we1 (Ce1, Csq, 1, 1), be1 (Ce1,),
      we3 (Ce3, Csq, 3, 3), be3 (Ce3,).
    """
    wsq, bsq, we1, be1, we3, be3 = params
    B, Cin, H, W = x_nchw.shape
    Csq, Ce1, Ce3 = wsq.shape[0], we1.shape[0], we3.shape[0]
    Cout = Ce1 + Ce3
    HW = H * W
    N = B * HW

    # Fold batch into the lane axis: (B, Cin, H, W) -> (Cin, B*H*W).
    # Tiny XLA transpose in the wrapper; the kernel then runs 1-2 big steps.
    x_flat = jnp.transpose(x_nchw, (1, 0, 2, 3)).reshape(Cin, N)

    # Lane-tile choice: 2 "parallel" tiles (one per v7x TensorCore) when the
    # batch splits evenly into lane-aligned whole-image tiles, else 1 tile.
    if lane_tiles is None:
        lane_tiles = 2 if (B >= 2 and B % 2 == 0
                           and ((B // 2) * HW) % 128 == 0) else 1
    assert B % lane_tiles == 0
    Bt = B // lane_tiles
    Nt = Bt * HW

    # --- weight plumbing (tiny tensors, done once outside the kernel) ------
    # Pad squeeze channels to a sublane multiple WITH one spare row for the
    # constant-1.0 bias trick.
    Csq_p = max(8, -(-(Csq + 1) // 8) * 8)
    wsq_m = jnp.zeros((Csq_p, Cin), jnp.float32).at[:Csq].set(
        wsq.reshape(Csq, Cin).astype(jnp.float32))
    bsq_c = (jnp.zeros((Csq_p, 1), jnp.float32)
             .at[:Csq, 0].set(bsq.astype(jnp.float32))
             .at[Csq, 0].set(1.0))                  # -> sq[Csq, :] == 1.0

    # Fused deep-K weight: block 0 = expand1x1 + centre 3x3 tap + bias column,
    # blocks 1..8 = the 8 off-centre taps (expand1x1 rows stay zero there).
    K = 9 * Csq_p
    w_all = jnp.zeros((Cout, K), jnp.float32)
    w_all = w_all.at[:Ce1, :Csq].set(we1.reshape(Ce1, Csq))
    w_all = w_all.at[Ce1:, :Csq].set(we3[:, :, 1, 1])
    w_all = w_all.at[:, Csq].set(jnp.concatenate([be1, be3], axis=0))
    for t, (dy, dx) in enumerate(_TAPS):
        base = (t + 1) * Csq_p
        w_all = w_all.at[Ce1:, base:base + Csq].set(we3[:, :, dy + 1, dx + 1])

    # Precomputed border masks (host numpy, no in-kernel div/mod). They are
    # HW-periodic, so every lane a roll wraps across an image (or batch)
    # boundary is exactly a masked border lane.
    pos = np.arange(HW)
    row, col = pos // W, pos % W
    ok_r = {-1: row >= 1, 0: np.ones(HW, bool), 1: row < H - 1}
    ok_c = {-1: col >= 1, 0: np.ones(HW, bool), 1: col < W - 1}
    mask_hw = np.stack([(ok_r[dy] & ok_c[dx]).astype(np.float32)
                        for dy, dx in _TAPS])                   # (8, HW)
    masks = jnp.asarray(np.tile(mask_hw, (1, Bt)))              # (8, Nt)

    kernel = make_fire_kernel(Csq_p, Nt, W)
    out = pl.pallas_call(
        kernel,
        out_shape=jax.ShapeDtypeStruct((Cout, N), jnp.float32),
        grid_spec=pltpu.PrefetchScalarGridSpec(
            num_scalar_prefetch=0,
            grid=(lane_tiles,),
            in_specs=[
                pl.BlockSpec((Cin, Nt), lambda i: (0, i)),
                pl.BlockSpec((Csq_p, Cin), lambda i: (0, 0)),
                pl.BlockSpec((Csq_p, 1), lambda i: (0, 0)),
                pl.BlockSpec((Cout, K), lambda i: (0, 0)),
                pl.BlockSpec((8, Nt), lambda i: (0, 0)),
            ],
            out_specs=pl.BlockSpec((Cout, Nt), lambda i: (0, i)),
            scratch_shapes=[pltpu.VMEM((K, Nt), jnp.float32)],
        ),
        compiler_params=pltpu.CompilerParams(
            dimension_semantics=("parallel",)),
    )(x_flat, wsq_m, bsq_c, w_all, masks)

    # (Cout, B*H*W) -> (B, Cout, H, W); e1 rows then e3 rows == torch.cat.
    return jnp.transpose(out.reshape(Cout, B, H, W), (1, 0, 2, 3))


def fire_reference(x_nchw, params):
    """Pure-JAX reference matching torch Fire.forward semantics."""
    wsq, bsq, we1, be1, we3, be3 = params

    def conv(x, w_oihw, b, padding):
        y = lax.conv_general_dilated(
            x, w_oihw, window_strides=(1, 1), padding=padding,
            dimension_numbers=('NCHW', 'OIHW', 'NCHW'))
        return y + b.reshape(1, -1, 1, 1)

    sq = jax.nn.relu(conv(x_nchw, wsq, bsq, 'VALID'))
    e1 = jax.nn.relu(conv(sq, we1, be1, 'VALID'))
    e3 = jax.nn.relu(conv(sq, we3, be3, ((1, 1), (1, 1))))
    return jnp.concatenate([e1, e3], axis=1)


if __name__ == "__main__":
    # Fire(inplanes=4, squeeze_planes=4, expand1x1_planes=8, expand3x3_planes=8)
    B, Cin, H, W = 2, 4, 16, 16
    Csq, Ce1, Ce3 = 4, 8, 8

    key = jax.random.PRNGKey(0)
    kx, k0, k1, k2, k3, k4, k5 = jax.random.split(key, 7)
    x = jax.random.normal(kx, (B, Cin, H, W), jnp.float32)

    # Parameters in torch Conv2d layout: (out, in, kh, kw) weights, (out,) bias.
    params = (
        0.2 * jax.random.normal(k0, (Csq, Cin, 1, 1), jnp.float32),
        0.1 * jax.random.normal(k1, (Csq,), jnp.float32),
        0.2 * jax.random.normal(k2, (Ce1, Csq, 1, 1), jnp.float32),
        0.1 * jax.random.normal(k3, (Ce1,), jnp.float32),
        0.2 * jax.random.normal(k4, (Ce3, Csq, 3, 3), jnp.float32),
        0.1 * jax.random.normal(k5, (Ce3,), jnp.float32),
    )

    out = jax.block_until_ready(fire_forward(x, params))
    ref = jax.block_until_ready(fire_reference(x, params))

    assert out.shape == (B, Ce1 + Ce3, H, W), out.shape
    np.testing.assert_allclose(np.asarray(out), np.asarray(ref),
                               atol=1e-4, rtol=1e-4)
    print("KERNEL_OK")
</pallas_src>

<mosaic_0001>
module attributes {stable_mosaic.version = 11 : i64} {
  func.func @kernel(%arg0: i32, %arg1: memref<4x256xf32, #tpu.memory_space<vmem>>, %arg2: memref<8x4xf32, #tpu.memory_space<vmem>>, %arg3: memref<8x1xf32, #tpu.memory_space<vmem>>, %arg4: memref<16x72xf32, #tpu.memory_space<vmem>>, %arg5: memref<8x256xf32, #tpu.memory_space<vmem>>, %arg6: memref<16x256xf32, #tpu.memory_space<vmem>>, %arg7: memref<72x256xf32, #tpu.memory_space<vmem>>) attributes {dimension_semantics = [#tpu.dimension_semantics<parallel>], iteration_bounds = array<i64: 2>, scalar_prefetch = 0 : i64, scratch_operands = 1 : i64, tpu.core_type = #tpu.core_type<tc>, window_params = [{transform_indices = @transform_0, window_bounds = array<i64: 4, 256>}, {pipeline_mode = #tpu.pipeline_mode<synchronous>, transform_indices = @transform_1, window_bounds = array<i64: 8, 4>}, {pipeline_mode = #tpu.pipeline_mode<synchronous>, transform_indices = @transform_2, window_bounds = array<i64: 8, 1>}, {pipeline_mode = #tpu.pipeline_mode<synchronous>, transform_indices = @transform_3, window_bounds = array<i64: 16, 72>}, {pipeline_mode = #tpu.pipeline_mode<synchronous>, transform_indices = @transform_4, window_bounds = array<i64: 8, 256>}, {transform_indices = @transform_5, window_bounds = array<i64: 16, 256>}]} {
    %c0 = arith.constant 0 : index
    %c0_0 = arith.constant 0 : index
    %0 = vector.load %arg2[%c0, %c0_0] : memref<8x4xf32, #tpu.memory_space<vmem>>, vector<8x4xf32>
    %c0_1 = arith.constant 0 : index
    %c0_2 = arith.constant 0 : index
    %1 = vector.load %arg1[%c0_1, %c0_2] : memref<4x256xf32, #tpu.memory_space<vmem>>, vector<4x256xf32>
    %cst = arith.constant dense<0.000000e+00> : vector<8x256xf32>
    %2 = tpu.matmul %0, %1, %cst {dimension_numbers = #tpu.dot_dimension_numbers<[1], [0], [0], [1], [0, 0, 1, 1], [], []>} : vector<8x4xf32>, vector<4x256xf32>, vector<8x256xf32> -> vector<8x256xf32>
    %c0_3 = arith.constant 0 : index
    %c0_4 = arith.constant 0 : index
    %3 = vector.load %arg3[%c0_3, %c0_4] : memref<8x1xf32, #tpu.memory_space<vmem>>, vector<8x1xf32>
    %4 = vector.broadcast %3 : vector<8x1xf32> to vector<8x256xf32>
    %5 = arith.addf %2, %4 : vector<8x256xf32>
    %cst_5 = arith.constant 0.000000e+00 : f32
    %6 = vector.broadcast %cst_5 : f32 to vector<8x256xf32>
    %7 = arith.maximumf %5, %6 : vector<8x256xf32>
    %c0_6 = arith.constant 0 : index
    %c0_7 = arith.constant 0 : index
    %8 = vector.load %arg7[%c0_6, %c0_7] : memref<72x256xf32, #tpu.memory_space<vmem>>, vector<8x256xf32>
    tpu.vector_store %arg7[%c0_6, %c0_7], %7 {strides = array<i32>} : memref<72x256xf32, #tpu.memory_space<vmem>>, vector<8x256xf32>,
    %c17_i32 = arith.constant 17 : i32
    %9 = tpu.dynamic_rotate %7 by %c17_i32 dim 1 : vector<8x256xf32>, i32 -> vector<8x256xf32>
    %c0_8 = arith.constant 0 : index
    %c0_9 = arith.constant 0 : index
    %10 = vector.load %arg5[%c0_8, %c0_9] : memref<8x256xf32, #tpu.memory_space<vmem>>, vector<1x256xf32>
    %11 = vector.broadcast %10 : vector<1x256xf32> to vector<8x256xf32>
    %12 = arith.mulf %9, %11 : vector<8x256xf32>
    %c8 = arith.constant 8 : index
    %c0_10 = arith.constant 0 : index
    %13 = vector.load %arg7[%c8, %c0_10] : memref<72x256xf32, #tpu.memory_space<vmem>>, vector<8x256xf32>
    tpu.vector_store %arg7[%c8, %c0_10], %12 {strides = array<i32>} : memref<72x256xf32, #tpu.memory_space<vmem>>, vector<8x256xf32>,
    %c16_i32 = arith.constant 16 : i32
    %14 = tpu.dynamic_rotate %7 by %c16_i32 dim 1 : vector<8x256xf32>, i32 -> vector<8x256xf32>
    %c1 = arith.constant 1 : index
    %c0_11 = arith.constant 0 : index
    %15 = vector.load %arg5[%c1, %c0_11] : memref<8x256xf32, #tpu.memory_space<vmem>>, vector<1x256xf32>
    %16 = vector.broadcast %15 : vector<1x256xf32> to vector<8x256xf32>
    %17 = arith.mulf %14, %16 : vector<8x256xf32>
    %c16 = arith.constant 16 : index
    %c0_12 = arith.constant 0 : index
    %18 = vector.load %arg7[%c16, %c0_12] : memref<72x256xf32, #tpu.memory_space<vmem>>, vector<8x256xf32>
    tpu.vector_store %arg7[%c16, %c0_12], %17 {strides = array<i32>} : memref<72x256xf32, #tpu.memory_space<vmem>>, vector<8x256xf32>,
    %c15_i32 = arith.constant 15 : i32
    %19 = tpu.dynamic_rotate %7 by %c15_i32 dim 1 : vector<8x256xf32>, i32 -> vector<8x256xf32>
    %c2 = arith.constant 2 : index
    %c0_13 = arith.constant 0 : index
    %20 = vector.load %arg5[%c2, %c0_13] : memref<8x256xf32, #tpu.memory_space<vmem>>, vector<1x256xf32>
    %21 = vector.broadcast %20 : vector<1x256xf32> to vector<8x256xf32>
    %22 = arith.mulf %19, %21 : vector<8x256xf32>
    %c24 = arith.constant 24 : index
    %c0_14 = arith.constant 0 : index
    %23 = vector.load %arg7[%c24, %c0_14] : memref<72x256xf32, #tpu.memory_space<vmem>>, vector<8x256xf32>
    tpu.vector_store %arg7[%c24, %c0_14], %22 {strides = array<i32>} : memref<72x256xf32, #tpu.memory_space<vmem>>, vector<8x256xf32>,
    %c1_i32 = arith.constant 1 : i32
    %24 = tpu.dynamic_rotate %7 by %c1_i32 dim 1 : vector<8x256xf32>, i32 -> vector<8x256xf32>
    %c3 = arith.constant 3 : index
    %c0_15 = arith.constant 0 : index
    %25 = vector.load %arg5[%c3, %c0_15] : memref<8x256xf32, #tpu.memory_space<vmem>>, vector<1x256xf32>
    %26 = vector.broadcast %25 : vector<1x256xf32> to vector<8x256xf32>
    %27 = arith.mulf %24, %26 : vector<8x256xf32>
    %c32 = arith.constant 32 : index
    %c0_16 = arith.constant 0 : index
    %28 = vector.load %arg7[%c32, %c0_16] : memref<72x256xf32, #tpu.memory_space<vmem>>, vector<8x256xf32>
    tpu.vector_store %arg7[%c32, %c0_16], %27 {strides = array<i32>} : memref<72x256xf32, #tpu.memory_space<vmem>>, vector<8x256xf32>,
    %c255_i32 = arith.constant 255 : i32
    %29 = tpu.dynamic_rotate %7 by %c255_i32 dim 1 : vector<8x256xf32>, i32 -> vector<8x256xf32>
    %c4 = arith.constant 4 : index
    %c0_17 = arith.constant 0 : index
    %30 = vector.load %arg5[%c4, %c0_17] : memref<8x256xf32, #tpu.memory_space<vmem>>, vector<1x256xf32>
    %31 = vector.broadcast %30 : vector<1x256xf32> to vector<8x256xf32>
    %32 = arith.mulf %29, %31 : vector<8x256xf32>
    %c40 = arith.constant 40 : index
    %c0_18 = arith.constant 0 : index
    %33 = vector.load %arg7[%c40, %c0_18] : memref<72x256xf32, #tpu.memory_space<vmem>>, vector<8x256xf32>
    tpu.vector_store %arg7[%c40, %c0_18], %32 {strides = array<i32>} : memref<72x256xf32, #tpu.memory_space<vmem>>, vector<8x256xf32>,
    %c241_i32 = arith.constant 241 : i32
    %34 = tpu.dynamic_rotate %7 by %c241_i32 dim 1 : vector<8x256xf32>, i32 -> vector<8x256xf32>
    %c5 = arith.constant 5 : index
    %c0_19 = arith.constant 0 : index
    %35 = vector.load %arg5[%c5, %c0_19] : memref<8x256xf32, #tpu.memory_space<vmem>>, vector<1x256xf32>
    %36 = vector.broadcast %35 : vector<1x256xf32> to vector<8x256xf32>
    %37 = arith.mulf %34, %36 : vector<8x256xf32>
    %c48 = arith.constant 48 : index
    %c0_20 = arith.constant 0 : index
    %38 = vector.load %arg7[%c48, %c0_20] : memref<72x256xf32, #tpu.memory_space<vmem>>, vector<8x256xf32>
    tpu.vector_store %arg7[%c48, %c0_20], %37 {strides = array<i32>} : memref<72x256xf32, #tpu.memory_space<vmem>>, vector<8x256xf32>,
    %c240_i32 = arith.constant 240 : i32
    %39 = tpu.dynamic_rotate %7 by %c240_i32 dim 1 : vector<8x256xf32>, i32 -> vector<8x256xf32>
    %c6 = arith.constant 6 : index
    %c0_21 = arith.constant 0 : index
    %40 = vector.load %arg5[%c6, %c0_21] : memref<8x256xf32, #tpu.memory_space<vmem>>, vector<1x256xf32>
    %41 = vector.broadcast %40 : vector<1x256xf32> to vector<8x256xf32>
    %42 = arith.mulf %39, %41 : vector<8x256xf32>
    %c56 = arith.constant 56 : index
    %c0_22 = arith.constant 0 : index
    %43 = vector.load %arg7[%c56, %c0_22] : memref<72x256xf32, #tpu.memory_space<vmem>>, vector<8x256xf32>
    tpu.vector_store %arg7[%c56, %c0_22], %42 {strides = array<i32>} : memref<72x256xf32, #tpu.memory_space<vmem>>, vector<8x256xf32>,
    %c239_i32 = arith.constant 239 : i32
    %44 = tpu.dynamic_rotate %7 by %c239_i32 dim 1 : vector<8x256xf32>, i32 -> vector<8x256xf32>
    %c7 = arith.constant 7 : index
    %c0_23 = arith.constant 0 : index
    %45 = vector.load %arg5[%c7, %c0_23] : memref<8x256xf32, #tpu.memory_space<vmem>>, vector<1x256xf32>
    %46 = vector.broadcast %45 : vector<1x256xf32> to vector<8x256xf32>
    %47 = arith.mulf %44, %46 : vector<8x256xf32>
    %c64 = arith.constant 64 : index
    %c0_24 = arith.constant 0 : index
    %48 = vector.load %arg7[%c64, %c0_24] : memref<72x256xf32, #tpu.memory_space<vmem>>, vector<8x256xf32>
    tpu.vector_store %arg7[%c64, %c0_24], %47 {strides = array<i32>} : memref<72x256xf32, #tpu.memory_space<vmem>>, vector<8x256xf32>,
    %c0_25 = arith.constant 0 : index
    %c0_26 = arith.constant 0 : index
    %49 = vector.load %arg4[%c0_25, %c0_26] : memref<16x72xf32, #tpu.memory_space<vmem>>, vector<16x72xf32>
    %c0_27 = arith.constant 0 : index
    %c0_28 = arith.constant 0 : index
    %50 = vector.load %arg7[%c0_27, %c0_28] : memref<72x256xf32, #tpu.memory_space<vmem>>, vector<72x256xf32>
    %cst_29 = arith.constant dense<0.000000e+00> : vector<16x256xf32>
    %51 = tpu.matmul %49, %50, %cst_29 {dimension_numbers = #tpu.dot_dimension_numbers<[1], [0], [0], [1], [0, 0, 1, 1], [], []>} : vector<16x72xf32>, vector<72x256xf32>, vector<16x256xf32> -> vector<16x256xf32>
    %cst_30 = arith.constant 0.000000e+00 : f32
    %52 = vector.broadcast %cst_30 : f32 to vector<16x256xf32>
    %53 = arith.maximumf %51, %52 : vector<16x256xf32>
    %c0_31 = arith.constant 0 : index
    %c0_32 = arith.constant 0 : index
    %54 = vector.load %arg6[%c0_31, %c0_32] : memref<16x256xf32, #tpu.memory_space<vmem>>, vector<16x256xf32>
    tpu.vector_store %arg6[%c0_31, %c0_32], %53 {strides = array<i32>} : memref<16x256xf32, #tpu.memory_space<vmem>>, vector<16x256xf32>,
    return
  }
  func.func @transform_0(%arg0: i32) -> (i32, i32) {
    %c0_i32 = arith.constant 0 : i32
    %c0_i32_0 = arith.constant 0 : i32
    return %c0_i32, %arg0 : i32, i32
  }
  func.func @transform_1(%arg0: i32) -> (i32, i32) {
    %c0_i32 = arith.constant 0 : i32
    %c0_i32_0 = arith.constant 0 : i32
    %c0_i32_1 = arith.constant 0 : i32
    return %c0_i32, %c0_i32_0 : i32, i32
  }
  func.func @transform_2(%arg0: i32) -> (i32, i32) {
    %c0_i32 = arith.constant 0 : i32
    %c0_i32_0 = arith.constant 0 : i32
    %c0_i32_1 = arith.constant 0 : i32
    return %c0_i32, %c0_i32_0 : i32, i32
  }
  func.func @transform_3(%arg0: i32) -> (i32, i32) {
    %c0_i32 = arith.constant 0 : i32
    %c0_i32_0 = arith.constant 0 : i32
    %c0_i32_1 = arith.constant 0 : i32
    return %c0_i32, %c0_i32_0 : i32, i32
  }
  func.func @transform_4(%arg0: i32) -> (i32, i32) {
    %c0_i32 = arith.constant 0 : i32
    %c0_i32_0 = arith.constant 0 : i32
    %c0_i32_1 = arith.constant 0 : i32
    return %c0_i32, %c0_i32_0 : i32, i32
  }
  func.func @transform_5(%arg0: i32) -> (i32, i32) {
    %c0_i32 = arith.constant 0 : i32
    %c0_i32_0 = arith.constant 0 : i32
    return %c0_i32, %arg0 : i32, i32
  }
}

</mosaic_0001>

<bundles_post_ra>
// kernel: tpu_custom_call.1
= control target key start
LH: loop header
LB: loop body
LE: loop exit
PB: predicated region body
PF: predicated region fallthrough
CT: control target
= control target key end

     0   :  { %10 = vsyncpa [#allocation4], 0  ;;  %s1257_s0 = inlined_call_operand.vmem [shape: f32[4,512], index: 0, kind: input, shape index: {}]   ;;  %s1258_s1 = inlined_call_operand.vmem [shape: f32[8,4], index: 1, kind: input, shape index: {}]   ;;  %s1259_s2 = inlined_call_operand.vmem [shape: f32[8,1], index: 2, kind: input, shape index: {}]   ;;  %s1260_s3 = inlined_call_operand.hbm [shape: f32[16,72], index: 3, kind: input, shape index: {}]   ;;  %s1261_s4 = inlined_call_operand.hbm [shape: f32[8,256], index: 4, kind: input, shape index: {}]   ;;  %s1262_s5 = inlined_call_operand.hbm [shape: f32[16,512], index: 5, kind: output, shape index: {}]  }
   0x1   :  { %11 = vsyncpa [#allocation7], 0 }
   0x2   :  { %12 = vsyncpa [#allocation5], 0 }
   0x3   :  { %14 = vsyncpa [#allocation5 + $0x1], 0  ;;  %s1036_s18 = smov 0   ;;  %s1038_s19 = smov 0  }
   0x4   :  { %s1040_s20 = smov 0   ;;  %s1042_s21 = smov 0  }
   0x5 LB: > { %s1057_s22 = sadd.s32 4294967295, %s987_s21   ;;  %s751_s23 = sadd.s32 4294967294, %s987_s21   ;;  %s987_s21 = sphi %s1042_s21, %s1276_s21   ;;  %s983_s20 = sphi %s1040_s20, %s1275_s20   ;;  %s979_s19 = sphi %s1038_s19, %s1274_s19   ;;  %s975_s18 = sphi %s1036_s18, %s1273_s18  }
   0x6   : > { %s1061_s24 = sadd.s32 1, %s987_s21   ;;  %s137_s25 = sadd.s32 1, %s983_s20 }
   0x7   : > { %s134_s26 = ssub.s32 %s987_s21, %s1061_s24  ;;  %p147_p0 = scmp.ne.s32.totalorder %s983_s20, %s979_s19 }
   0x8   : > { %p135_p1 = scmp.eq.s32.totalorder %s134_s26, 0  ;;  %p148_p2 = scmp.eq.s32.totalorder %s1057_s22, 1 }
   0x9   : > { %p153_p3 = scmp.ne.s32.totalorder %s979_s19, %s975_s18  ;;  %p154_p4 = scmp.eq.s32.totalorder %s751_s23, 1 }
   0xa   : > { %s1072_s27 = scalar_select %p135_p1, %s983_s20, %s137_s25  }
   0xb   : > { %p1074_p5 = por %p148_p2, %p147_p0  ;;  %p1078_p6 = por %p154_p4, %p153_p3 }
   0xc   : > { %p752_p7 = scmp.ge.s32.totalorder %s987_s21, 1  ;;  %p161_p8 = scmp.lt.s32.totalorder %s987_s21, 3 }
   0xd   : > { %s1265_s29 = scalar_select %p1078_p6, 1, 0 }
   0xe   : > { %p1263_p9 = scmp.eq.s32.totalorder %s1057_s22, 0  ;;  %p1085_p10 = pnand %p752_p7, %p161_p8 }
   0xf   : > { %s989_s6 = smov [#allocation3]   ;;  %s990_s9 = smov [#allocation6]  }
  0x10   : > { %s179_s7 = sshll.u32 %s989_s6, 4  ;;  %p801_p11 = pneg %p1085_p10  ;;  %s180_s7 = int_to_ptr.vmem [resolvable:$true] %s179_s7 }
  0x11   : > { %s193_s10 = sshll.u32 %s990_s9, 4  ;;  %s878_s11 = scalar_lea.vmem %s180_s7, 256  ;;  %s194_s10 = int_to_ptr.vmem [resolvable:$true] %s193_s10 }
  0x12   : > { %p1093_p12 = pnand %p1263_p9, %p801_p11  ;;  %p879_p0 = scmp.ne.s32.totalorder %s180_s7, %s878_s11 }
  0x13   : > { %p886_p3 = scmp.lt.s32.totalorder %s180_s7, %s180_s7  ;;  %p887_p4 = scmp.lt.s32.totalorder %s878_s11, %s878_s11 }
  0x14   : > { %p869_p13 = pneg %p1093_p12 }
  0x15   : > { %p888_p7 = por %p887_p4, %p886_p3 }
  0x16   : > { %p881_p1 = pnand %p879_p0, %p869_p13 }
  0x18   : > { %p882_p2 = pneg %p881_p1 }
  0x1a   : > { %p889_p8 = pnand %p888_p7, %p882_p2 }
  0x1c   : > { %892 = shalt.err (!%p889_p8)
}
  0x1d   : > { %s991_s12 = smov 128   ;;  %s992_s13 = smov 8  }
  0x1e   : > { %804 = dma.hbm_to_vmem [thread:$0]  (!%p1093_p12), %s1260_s3, 256, %s180_s7, [#allocation4], %s991_s12, %s991_s12, %s992_s13  }
  0x1f   : > { %s904_s16 = scalar_lea.vmem %s194_s10, 256  ;;  %p912_p9 = scmp.lt.s32.totalorder %s194_s10, %s194_s10 }
  0x20   : > { %p905_p11 = scmp.ne.s32.totalorder %s194_s10, %s904_s16  ;;  %p913_p6 = scmp.lt.s32.totalorder %s904_s16, %s904_s16 }
  0x22   : > { %p907_p0 = pnand %p905_p11, %p869_p13  ;;  %p914_p3 = por %p913_p6, %p912_p9 }
  0x24   : > { %p908_p1 = pneg %p907_p0 }
  0x26   : > { %p915_p2 = pnand %p914_p3, %p908_p1 }
  0x28   : > { %918 = shalt.err (!%p915_p2)
}
  0x29   : > { %807 = dma.hbm_to_vmem [thread:$0]  (!%p1093_p12), %s1261_s4, 256, %s194_s10, [#allocation7]  }
  0x2a   : > { %215 = sbr.rel (%p1085_p10) target bundleno = 620 (0x26c), region = 40  ;;  %p1268_p4 = scmp.eq.s32.totalorder (!%p1085_p10), %s1057_s22, 0 }
  0x2f   : > { %962 = dma.done.wait (%p1268_p4), [#allocation4], 256   ;;  %p1269_p13 = pmov %p1268_p4 }
  0x30   : > { %p1270_p7 = pmov %p1268_p4 }
  0x31   : > { %964 = vsyncadd (%p1269_p13), [#allocation4], 4294967040 }
  0x32   : > { %966 = dma.done.wait (%p1270_p7), [#allocation7], 256   ;;  %p1271_p6 = pmov %p1268_p4 }
  0x33   : > { %s760_s25 = sshll.u32 %s1057_s22, 1  ;;  %v993_v0 = vmov 0.0   ;;  %v994_v1 = vmov 0   ;;  %vm268_vm0 = vcmask 1043456   ;;  %v256_v3 = vld [vmem:[%s1259_s2] sm:$0xff]  ;;  %vm264_vm1 = vcmask 31744  }
  0x34   : > { %968 = vsyncadd (%p1271_p6), [#allocation7], 4294967040  ;;  %p248_p9 = scmp.lt.s32.totalorder %s760_s25, 3  ;;  %337 = vmatprep.mubr.f32.mxu0 %v993_v0  ;;  %638 = vmatprep.mubr.f32.mxu1 %v993_v0  ;;  %v254_v5 = vld [vmem:[%s1258_s1] sm:$0xff]  ;;  %s995_s12 = smov 112   ;;  %v352_v15 = vlaneseq  ;;  %vm561_vm10 = vcmask 588800  }
  0x35   : > { %865 = vset.pattern.permute.xlu0 %v994_v1  ;;  %s996_s13 = smov 111   ;;  %s997_s14 = smov 113   ;;  %v525_v20 = vld [vmem:[#allocation6 + $0x7] ss:$8 sm:$0x3] }
  0x36   : > { %s1278_s25 = smov (!%p248_p9, %s760_s25), 3  ;;  %259 = vperm.xlu0 %865, %v256_v3   ;;  %s998_s15 = smov 127   ;;  %v360_v17 = vshrl.u32 %v352_v15, 7  ;;  %v1157_v19 = vand.u32 127, %v352_v15 }
  0x37   : > { %s761_s26 = sshll.u32 %s1278_s25, 2  ;;  %s999_s16 = smov 1   ;;  %v501_v25 = vld [vmem:[#allocation6 + $0x6] ss:$8 sm:$0x3] }
  0x38   : > { %s251_s7 = scalar_lea.vmem %s1257_s0, %s761_s26  ;;  %s1000_s17 = smov 15   ;;  %v1159_v21 = vsub.s32 0, %v360_v17  ;;  %v1161_v22 = vsub.s32 1, %v360_v17  ;;  %vm497_vm2 = vcmp.lt.s32.totalorder %v1157_v19, 112  ;;  %vm521_vm3 = vcmp.lt.s32.totalorder %v1157_v19, 111 }
  0x39   : > { %v255_v2 = vld [vmem:[%s251_s7] sm:$0xff]  ;;  %s1001_s23 = smov 16   ;;  %s1002_s25 = smov 17   ;;  %v477_v26 = vld [vmem:[#allocation6 + $0x5] ss:$8 sm:$0x3] }
  0x3a   : > { %v263_v4 = vcombine.high %v255_v2, %v255_v2  ;;  %v530_v27 = vrot.slane %v525_v20, %v1159_v21  ;;  %v534_v28 = vrot.slane %v525_v20, %v1161_v22  ;;  %v506_v29 = vrot.slane %v501_v25, %v1159_v21  ;;  %v453_v32 = vld [vmem:[#allocation6 + $0x4] ss:$8 sm:$0x3]  ;;  %v429_v41 = vld [vmem:[#allocation6 + $0x3] ss:$8 sm:$0x3] }
  0x3b   : > { %v510_v30 = vrot.slane %v501_v25, %v1161_v22  ;;  %vm473_vm4 = vcmp.lt.s32.totalorder %v1157_v19, 113  ;;  %v486_v35 = vrot.slane %v477_v26, %v1161_v22  ;;  %vm449_vm5 = vcmp.lt.s32.totalorder %v1157_v19, 127  ;;  %v405_v50 = vld [vmem:[#allocation6 + $0x2] ss:$8 sm:$0x3]  ;;  %s244_s26 = sand.u32 1, %s979_s19  }
  0x3c   : > { %762 = vmatprep.subr.msk.mxu0 %vm268_vm0, %v263_v4  ;;  %v482_v42 = vrot.slane %v477_v26, %v1159_v21  ;;  %v458_v44 = vrot.slane %v453_v32, %v1159_v21  ;;  %v462_v47 = vrot.slane %v453_v32, %v1161_v22  ;;  %vm425_vm6 = vcmp.lt.s32.totalorder %v1157_v19, 1  ;;  %v381_v57 = vld [vmem:[#allocation6 + $0x1] ss:$8 sm:$0x3]  ;;  %s759_s30 = sshll.u32 %s244_s26, 5  ;;  %s772_s8 = sshll.u32 %s1057_s22, 8 }
  0x3d   : > { %763 = vmatpush1.msk.msra.mxu0 %vm268_vm0, %v255_v2  ;;  %v434_v53 = vrot.slane %v429_v41, %v1159_v21  ;;  %v438_v56 = vrot.slane %v429_v41, %v1161_v22  ;;  %vm401_vm7 = vcmp.lt.s32.totalorder %v1157_v19, 15  ;;  %v410_v60 = vrot.slane %v405_v50, %v1159_v21  ;;  %s246_s6 = scalar_lea.vmem [#allocation8], %s759_s30  ;;  %s1214_s11 = scalar_lea.hbm %s1262_s5, %s772_s8 }
  0x3e   : > { %764 = vmatmul.mubr.msk.f32.vlgmr.msra.gmra.mxu0 %vm264_vm1, %v254_v5  ;;  %v386_v4 = vrot.slane %v381_v57, %v1159_v21  ;;  %v357_v5 = vld [vmem:[#allocation6] ss:$8 sm:$0x3]  ;;  %vm377_vm8 = vcmp.lt.s32.totalorder %v1157_v19, 16  ;;  %vm354_vm9 = vcmp.lt.s32.totalorder %v1157_v19, 17  ;;  %v541_v19 = vld [vmem:[#allocation3] sm:$0xff] }
  0x3f   : > { %632 = vmatprep.mubr.f32.mxu0 %v993_v0  ;;  %v414_v0 = vrot.slane %v405_v50, %v1161_v22  ;;  %v362_v15 = vrot.slane %v357_v5, %v1159_v21  ;;  %s667_s7 = sshll.u32 %s246_s6, 4  ;;  %s1216_s22 = scalar_lea.sflag [#allocation5], %s244_s26  ;;  %s1209_s7 = int_to_ptr.vmem [resolvable:$true] %s667_s7 }
  0xb1   : > { %v260_v6 = vpop.permute.xlu0 %259 }
  0xfe   : > { %v339_v7 = vpop.f32.mrf.mxu0 }
  0xff   : > { %v340_v8 = vadd.f32 %v339_v7, %v260_v6 }
 0x100   : > { %v341_v9 = vpop.f32.mrf.mxu0 }
 0x101   : > { %v1135_v10 = vmax.f32 %v340_v8, 0.0  ;;  %v342_v11 = vadd.f32 %v341_v9, %v260_v6  ;;  %v390_v8 = vrot.slane %v381_v57, %v1161_v22 }
 0x103   : > { %493 = vrot.lane.b32.xlu1 %v1135_v10, %s995_s12  ;;  %517 = vrot.lane.b32.xlu0 %v1135_v10, %s996_s13  ;;  %v1139_v12 = vmax.f32 %v342_v11, 0.0 }
 0x107   : > { %469 = vrot.lane.b32.xlu1 %v1135_v10, %s997_s14  ;;  %495 = vrot.lane.b32.xlu0 %v1139_v12, %s995_s12  ;;  %s919_s12 = scalar_lea.vmem %s1209_s7, 512 }
 0x108   : > { %p920_p10 = scmp.ne.s32.totalorder %s1209_s7, %s919_s12 }
 0x10a   : > { %p921_p12 = pnand %p920_p10, %p1074_p5 }
 0x10b   : > { %445 = vrot.lane.b32.xlu1 %v1135_v10, %s998_s15  ;;  %471 = vrot.lane.b32.xlu0 %v1139_v12, %s997_s14 }
 0x10c   : > { %p922_p8 = pneg %p921_p12 }
 0x10f   : > { %519 = vrot.lane.b32.xlu1 %v1139_v12, %s996_s13  ;;  %447 = vrot.lane.b32.xlu0 %v1139_v12, %s998_s15  ;;  %s1003_s13 = smov [#allocation8]  }
 0x110   : > { %s923_s14 = sshll.u32 %s1003_s13, 4  ;;  %s924_s14 = int_to_ptr.vmem [resolvable:$false] %s923_s14 }
 0x111   : > { %s925_s15 = scalar_lea.vmem %s924_s14, 1024  ;;  %p926_p11 = scmp.lt.s32.totalorder %s1209_s7, %s924_s14 }
 0x112   : > { %p927_p0 = scmp.lt.s32.totalorder %s925_s15, %s919_s12 }
 0x113   : > { %421 = vrot.lane.b32.xlu1 %v1135_v10, %s999_s16  ;;  %423 = vrot.lane.b32.xlu0 %v1139_v12, %s999_s16 }
 0x114   : > { %p928_p1 = por %p927_p0, %p926_p11 }
 0x116   : > { %p929_p3 = pnand %p928_p1, %p922_p8 }
 0x117   : > { %397 = vrot.lane.b32.xlu1 %v1135_v10, %s1000_s17  ;;  %399 = vrot.lane.b32.xlu0 %v1139_v12, %s1000_s17 }
 0x11b   : > { %373 = vrot.lane.b32.xlu1 %v1135_v10, %s1001_s23  ;;  %375 = vrot.lane.b32.xlu0 %v1139_v12, %s1001_s23 }
 0x11f   : > { %348 = vrot.lane.b32.xlu1 %v1135_v10, %s1002_s25  ;;  %350 = vrot.lane.b32.xlu0 %v1139_v12, %s1002_s25 }
 0x175   : > { %v494_v13 = vpop.permute.xlu1 %493  ;;  %v518_v14 = vpop.permute.xlu0 %517 }
 0x179   : > { %v470_v16 = vpop.permute.xlu1 %469  ;;  %v496_v18 = vpop.permute.xlu0 %495 }
 0x17a   : > { %v499_v34 = vsel %vm497_vm2, %v496_v18, %v494_v13  ;;  %v498_v38 = vsel %vm497_vm2, %v494_v13, %v496_v18 }
 0x17b   : > { %v514_v45 = vmul.f32 %v510_v30, %v499_v34  ;;  %v513_v51 = vmul.f32 %v506_v29, %v498_v38 }
 0x17d   : > { %v446_v23 = vpop.permute.xlu1 %445  ;;  %v472_v24 = vpop.permute.xlu0 %471 }
 0x17e   : > { %v475_v43 = vsel %vm473_vm4, %v472_v24, %v470_v16  ;;  %v474_v46 = vsel %vm473_vm4, %v470_v16, %v472_v24  ;;  %v366_v24 = vrot.slane %v357_v5, %v1161_v22  ;;  %v542_v22 = vld [vmem:[#allocation3 + $0x8] sm:$0xff] }
 0x17f   : > { %v490_v54 = vmul.f32 %v486_v35, %v475_v43  ;;  %v489_v58 = vmul.f32 %v482_v42, %v474_v46 }
 0x181   : > { %v520_v31 = vpop.permute.xlu1 %519  ;;  %v448_v33 = vpop.permute.xlu0 %447 }
 0x182   : > { %v522_v36 = vsel %vm521_vm3, %v518_v14, %v520_v31  ;;  %v523_v37 = vsel %vm521_vm3, %v520_v31, %v518_v14  ;;  %v451_v52 = vsel %vm449_vm5, %v448_v33, %v446_v23  ;;  %v450_v55 = vsel %vm449_vm5, %v446_v23, %v448_v33 }
 0x183   : > { %v537_v39 = vmul.f32 %v530_v27, %v522_v36  ;;  %v538_v40 = vmul.f32 %v534_v28, %v523_v37  ;;  %v466_v61 = vmul.f32 %v462_v47, %v451_v52  ;;  %v465_v2 = vmul.f32 %v458_v44, %v450_v55 }
 0x185   : > { %v422_v48 = vpop.permute.xlu1 %421  ;;  %582 = vmatprep.subr.mxu0 %v538_v40  ;;  %773 = vmatprep.subr.mxu1 %v538_v40  ;;  %v424_v49 = vpop.permute.xlu0 %423 }
 0x186   : > { %583 = vmatpush1.msra.mxu0 %v537_v39  ;;  %782 = vmatpush1.msra.mxu1 %v537_v39  ;;  %v426_v59 = vsel %vm425_vm6, %v422_v48, %v424_v49  ;;  %v427_v62 = vsel %vm425_vm6, %v424_v49, %v422_v48 }
 0x187   : > { %584 = vmatprep.subr.mxu0 %v514_v45  ;;  %774 = vmatprep.subr.mxu1 %v514_v45  ;;  %v442_v6 = vmul.f32 %v438_v56, %v426_v59  ;;  %v441_v9 = vmul.f32 %v434_v53, %v427_v62 }
 0x188   : > { %585 = vmatpush1.msra.mxu0 %v513_v51  ;;  %783 = vmatpush1.msra.mxu1 %v513_v51 }
 0x189   : > { %v398_v63 = vpop.permute.xlu1 %397  ;;  %586 = vmatprep.subr.mxu0 %v490_v54  ;;  %775 = vmatprep.subr.mxu1 %v490_v54  ;;  %v400_v1 = vpop.permute.xlu0 %399 }
 0x18a   : > { %v402_v3 = vsel %vm401_vm7, %v398_v63, %v400_v1  ;;  %587 = vmatpush1.msra.mxu0 %v489_v58  ;;  %784 = vmatpush1.msra.mxu1 %v489_v58  ;;  %v403_v7 = vsel %vm401_vm7, %v400_v1, %v398_v63 }
 0x18b   : > { %588 = vmatprep.subr.mxu0 %v466_v61  ;;  %776 = vmatprep.subr.mxu1 %v466_v61  ;;  %v418_v11 = vmul.f32 %v414_v0, %v402_v3  ;;  %v417_v16 = vmul.f32 %v410_v60, %v403_v7 }
 0x18c   : > { %589 = vmatpush1.msra.mxu0 %v465_v2  ;;  %785 = vmatpush1.msra.mxu1 %v465_v2 }
 0x18d   : > { %v374_v13 = vpop.permute.xlu1 %373  ;;  %590 = vmatprep.subr.mxu0 %v442_v6  ;;  %777 = vmatprep.subr.mxu1 %v442_v6  ;;  %v376_v14 = vpop.permute.xlu0 %375 }
 0x18e   : > { %v378_v17 = vsel %vm377_vm8, %v374_v13, %v376_v14  ;;  %v379_v18 = vsel %vm377_vm8, %v376_v14, %v374_v13  ;;  %591 = vmatpush1.msra.mxu0 %v441_v9  ;;  %786 = vmatpush1.msra.mxu1 %v441_v9 }
 0x18f   : > { %v393_v20 = vmul.f32 %v386_v4, %v379_v18  ;;  %v394_v23 = vmul.f32 %v390_v8, %v378_v17  ;;  %592 = vmatprep.subr.mxu0 %v418_v11  ;;  %778 = vmatprep.subr.mxu1 %v418_v11 }
 0x190   : > { %593 = vmatpush1.msra.mxu0 %v417_v16  ;;  %787 = vmatpush1.msra.mxu1 %v417_v16 }
 0x191   : > { %v349_v25 = vpop.permute.xlu1 %348  ;;  %594 = vmatprep.subr.mxu0 %v394_v23  ;;  %779 = vmatprep.subr.mxu1 %v394_v23  ;;  %v351_v26 = vpop.permute.xlu0 %350 }
 0x192   : > { %v355_v21 = vsel %vm354_vm9, %v349_v25, %v351_v26  ;;  %v356_v27 = vsel %vm354_vm9, %v351_v26, %v349_v25  ;;  %595 = vmatpush1.msra.mxu0 %v393_v20  ;;  %788 = vmatpush1.msra.mxu1 %v393_v20 }
 0x193   : > { %v369_v28 = vmul.f32 %v362_v15, %v356_v27  ;;  %v370_v29 = vmul.f32 %v366_v24, %v355_v21 }
 0x195   : > { %596 = vmatprep.subr.mxu0 %v370_v29  ;;  %780 = vmatprep.subr.mxu1 %v370_v29 }
 0x196   : > { %597 = vmatpush1.msra.mxu0 %v369_v28  ;;  %789 = vmatpush1.msra.mxu1 %v369_v28 }
 0x197   : > { %598 = vmatprep.subr.mxu0 %v1139_v12  ;;  %781 = vmatprep.subr.mxu1 %v1139_v12 }
 0x198   : > { %599 = vmatpush1.msra.mxu0 %v1135_v10  ;;  %790 = vmatpush1.msra.mxu1 %v1135_v10 }
 0x199   : > { %765 = vmatmul.mubr.msk.f32.vlgmr.msra.gmra.mxu0 %vm561_vm10, %v541_v19  ;;  %766 = vmatmul.mubr.msk.f32.vlgmr.msra.gmra.mxu1 %vm561_vm10, %v542_v22 }
 0x259   : > { %v634_v30 = vpop.f32.mrf.mxu0  ;;  %v640_v31 = vpop.f32.mrf.mxu1 }
 0x25a   : > { %v645_v32 = vmax.f32 %v634_v30, 0.0  ;;  %v647_v33 = vmax.f32 %v640_v31, 0.0 }
 0x25b   : > { %v636_v12 = vpop.f32.mrf.mxu0  ;;  %v642_v34 = vpop.f32.mrf.mxu1 }
 0x25c   : > { %649 = vst [vmem:[%s246_s6] sm:$0xff] %v645_v32  ;;  %651 = vst [vmem:[%s246_s6 + $0x10] sm:$0xff] %v647_v33  ;;  %v646_v10 = vmax.f32 %v636_v12, 0.0  ;;  %v648_v35 = vmax.f32 %v642_v34, 0.0 }
 0x25e   : > { %650 = vst [vmem:[%s246_s6 + $0x8] sm:$0xff] %v646_v10  ;;  %652 = vst [vmem:[%s246_s6 + $0x18] sm:$0xff] %v648_v35 }
 0x25f   : > { %932 = shalt.err (!%p929_p3)
}
 0x260   : > { %s933_s16 = scalar_lea.hbm %s1214_s11, 512  ;;  %s937_s26 = scalar_lea.hbm %s1262_s5, 1024 }
 0x261   : > { %p934_p2 = scmp.ne.s32.totalorder %s1214_s11, %s933_s16  ;;  %p938_p7 = scmp.lt.s32.totalorder %s1214_s11, %s1262_s5 }
 0x262   : > { %p939_p6 = scmp.lt.s32.totalorder %s937_s26, %s933_s16 }
 0x263   : > { %p935_p4 = pnand %p934_p2, %p1074_p5 }
 0x264   : > { %p940_p9 = por %p939_p6, %p938_p7 }
 0x265   : > { %p936_p13 = pneg %p935_p4 }
 0x267   : > { %p941_p10 = pnand %p940_p9, %p936_p13 }
 0x269   : > { %944 = shalt.err (!%p941_p10)
}
 0x26a   : > { %s1004_s8 = smov 256   ;;  %s1005_s9 = smov 512  }
 0x26b   : > { %799 = dma.vmem_to_hbm [thread:$0]  (%p1074_p5), %s1209_s7, 512, %s1214_s11, %s1216_s22, %s1004_s8, %s1005_s9, %s1001_s23  }
 0x26c PF: > { %p816_p12 = scmp.ge.s32.totalorder %s987_s21, 2  ;;  %s682_s10 = sand.u32 1, %s975_s18  }
 0x26d   : > { %p1272_p8 = scmp.ne.s32.totalorder %s1265_s29, 0  ;;  %s683_s12 = scalar_lea.sflag [#allocation5], %s682_s10 }
 0x26f   : > { %p809_p11 = pnand %p816_p12, %p1272_p8 }
 0x271   : > { %p810_p0 = pneg %p809_p11 }
 0x273   : > { %970 = dma.done.wait (%p810_p0), %s683_s12, 512  }
 0x274   : > { %972 = vsyncadd (%p810_p0), %s683_s12, 4294966784  ;;  %p17_p1 = scmp.ge.s32.totalorder %s1061_s24, 4   ;;  %s1273_s18 = smov %s979_s19 }
 0x275   : > { %s1274_s19 = smov %s983_s20  ;;  %s1275_s20 = smov %s1072_s27 }
 0x276   : > { %s1276_s21 = smov %s1061_s24  ;;  %19 = sbr.rel (!%p17_p1) target bundleno = 5 (0x5), region = 91 }
 0x27b   :  { %688 = vsyncpa [#allocation4], 1 }
 0x27c   :  { %690 = vsyncpa [#allocation4 + $0x1], 1 }
 0x27d   :  { %691 = vsyncpa [#allocation7], 1 }
 0x27e   :  { %692 = vsyncpa [#allocation5], 1 }
 0x27f   :  { %694 = vsyncpa [#allocation5 + $0x1], 1 }

</bundles_post_ra>
